<compile_context>
chip_gen: v5e
topology: v5e:2x2
jax: 0.10.0
libtpu: 0.0.40
codegen_flags: <defaults>
</compile_context>

<pallas_src>
import functools

import jax
import jax.numpy as jnp
from jax.experimental import pallas as pl
from jax.experimental.pallas import tpu as pltpu


def _round_up(n: int, m: int) -> int:
    return ((n + m - 1) // m) * m


def _cdiv(a: int, b: int) -> int:
    return (a + b - 1) // b


def _batch_tiling(B: int, block_m: int):
    """Balanced batch tiles, rounded to 16 rows (bf16 sublane packing).

    Ensures >=2 tiles when the batch is big enough so the 'parallel' grid axis
    can shard across both TensorCores on v7x.
    """
    n_tiles = max(1, _cdiv(B, block_m))
    if n_tiles == 1 and B >= 32:
        n_tiles = 2
    bm = max(16, _round_up(_cdiv(B, n_tiles), 16))
    n_tiles = _cdiv(B, bm)
    B_pad = n_tiles * bm
    return bm, n_tiles, B_pad


def _mlp_kernel(x_ref, w1_ref, b1_ref, w2_ref, b2_ref, w3_ref, b3_ref, o_ref):
    # fc1 + ReLU  (bf16 MXU inputs, f32 accumulation, f32 bias/ReLU)
    h1 = jnp.dot(x_ref[...], w1_ref[...], preferred_element_type=jnp.float32)
    h1 = jnp.maximum(h1 + b1_ref[...], 0.0)
    # fc2 + ReLU
    h2 = jnp.dot(h1.astype(jnp.bfloat16), w2_ref[...],
                 preferred_element_type=jnp.float32)
    h2 = jnp.maximum(h2 + b2_ref[...], 0.0)
    # fc3 (no activation)
    out = jnp.dot(h2.astype(jnp.bfloat16), w3_ref[...],
                  preferred_element_type=jnp.float32) + b3_ref[...]
    o_ref[...] = out.astype(o_ref.dtype)


def prepare_mlp_params(w1, b1, w2, b2, w3, b3):
    """Pad feature dims to multiples of 128 and cast weights to bf16.

    Run ONCE at init; the padded params are reused by every mlp_forward call
    (the per-call weight repack was a full extra HBM pass).
    """
    in_dim, hidden = w1.shape
    out_dim = w3.shape[1]
    in_p = _round_up(in_dim, 128)
    hid_p = _round_up(hidden, 128)
    out_p = _round_up(out_dim, 128)
    bf16, f32 = jnp.bfloat16, jnp.float32
    w1p = jnp.pad(w1.astype(bf16), ((0, in_p - in_dim), (0, hid_p - hidden)))
    w2p = jnp.pad(w2.astype(bf16), ((0, hid_p - hidden), (0, hid_p - hidden)))
    w3p = jnp.pad(w3.astype(bf16), ((0, hid_p - hidden), (0, out_p - out_dim)))
    b1p = jnp.pad(b1.astype(f32), (0, hid_p - hidden)).reshape(1, hid_p)
    b2p = jnp.pad(b2.astype(f32), (0, hid_p - hidden)).reshape(1, hid_p)
    b3p = jnp.pad(b3.astype(f32), (0, out_p - out_dim)).reshape(1, out_p)
    return w1p, b1p, w2p, b2p, w3p, b3p


@functools.partial(jax.jit, static_argnames=("out_dim", "block_m"))
def mlp_forward(x, w1p, b1p, w2p, b2p, w3p, b3p, *, out_dim, block_m=256):
    """Fused 3-layer MLP forward.

    x: (B, in_dim). Padded params come from prepare_mlp_params().
    block_m: batch tile target. 256 is a good default on v5e/v7x; 512 better
    amortizes per-grid-step overhead on v6e (128 MiB VMEM) for large B.
    """
    B, in_dim = x.shape
    in_p, hid_p = w1p.shape
    out_p = w3p.shape[1]
    assert in_dim <= in_p and out_dim <= out_p

    bm, n_tiles, B_pad = _batch_tiling(B, block_m)

    # Pad / cast x only if needed (avoid a second full HBM copy when aligned).
    xp = x.astype(jnp.bfloat16)
    if B_pad != B or in_p != in_dim:
        xp = jnp.pad(xp, ((0, B_pad - B), (0, in_p - in_dim)))

    out_dtype = x.dtype
    out_isize = x.dtype.itemsize

    # VMEM budget from actual buffer sizes (+2x headroom for compiler scratch:
    # h1/h2 f32 temporaries are already included, MXU staging is not).
    # TODO(synk): for very large hidden (hid_p >= ~2048 at block_m=256 on
    # v7x's 64 MiB VMEM) add a hidden-dim grid axis for fc2 with an f32
    # accumulator scratch instead of keeping w2 fully resident; optionally
    # fp8-quantize weights on v7x to halve the H^2 VMEM term.
    weight_bytes = 2 * (in_p * hid_p + hid_p * hid_p + hid_p * out_p)  # Buffered(1)
    bias_bytes = 4 * (2 * hid_p + out_p)
    io_bytes = 2 * (2 * bm * in_p) + 2 * (bm * out_p * out_isize)      # double-buffered
    tmp_bytes = 2 * (bm * hid_p * 4)                                   # h1/h2 f32
    vmem_limit = int(min(max(2 * (weight_bytes + bias_bytes + io_bytes + tmp_bytes),
                             32 * 1024 * 1024),
                         64 * 1024 * 1024))

    flops = 2 * B_pad * (in_p * hid_p + hid_p * hid_p + hid_p * out_p)
    bytes_accessed = (B_pad * in_p * 2 + weight_bytes + bias_bytes
                      + B_pad * out_p * out_isize)

    full = lambda i: (0, 0)
    resident = dict(index_map=full, pipeline_mode=pl.Buffered(1))

    out = pl.pallas_call(
        _mlp_kernel,
        out_shape=jax.ShapeDtypeStruct((B_pad, out_p), out_dtype),
        grid_spec=pltpu.PrefetchScalarGridSpec(
            num_scalar_prefetch=0,
            grid=(n_tiles,),
            in_specs=[
                pl.BlockSpec((bm, in_p), lambda i: (i, 0)),      # x tile
                pl.BlockSpec((in_p, hid_p), **resident),         # w1
                pl.BlockSpec((1, hid_p), **resident),            # b1
                pl.BlockSpec((hid_p, hid_p), **resident),        # w2
                pl.BlockSpec((1, hid_p), **resident),            # b2
                pl.BlockSpec((hid_p, out_p), **resident),        # w3
                pl.BlockSpec((1, out_p), **resident),            # b3
            ],
            out_specs=pl.BlockSpec((bm, out_p), lambda i: (i, 0)),
        ),
        compiler_params=pltpu.CompilerParams(
            dimension_semantics=("parallel",),
            vmem_limit_bytes=vmem_limit,
        ),
        cost_estimate=pl.CostEstimate(
            flops=flops, transcendentals=0, bytes_accessed=bytes_accessed),
    )(xp, w1p, b1p, w2p, b2p, w3p, b3p)

    if B_pad != B or out_p != out_dim:
        out = out[:B, :out_dim]
    return out


def init_mlp_params(key, in_dim, out_dim, hidden_dim):
    """Deterministic init mimicking nn.Linear default U[-1/sqrt(fan_in), +]."""
    ks = jax.random.split(key, 6)

    def linear(kw, kb, fan_in, fan_out):
        bound = 1.0 / jnp.sqrt(fan_in)
        w = jax.random.uniform(kw, (fan_in, fan_out), jnp.float32, -bound, bound)
        b = jax.random.uniform(kb, (fan_out,), jnp.float32, -bound, bound)
        return w, b

    w1, b1 = linear(ks[0], ks[1], in_dim, hidden_dim)
    w2, b2 = linear(ks[2], ks[3], hidden_dim, hidden_dim)
    w3, b3 = linear(ks[4], ks[5], hidden_dim, out_dim)
    return w1, b1, w2, b2, w3, b3


def mlp_reference(x, w1, b1, w2, b2, w3, b3):
    h = jax.nn.relu(x @ w1 + b1)
    h = jax.nn.relu(h @ w2 + b2)
    return h @ w3 + b3


if __name__ == "__main__":
    # Small shapes consistent with the module (Linear -> ReLU -> Linear -> ReLU -> Linear)
    batch, in_dim, hidden_dim, out_dim = 8, 32, 128, 16

    key = jax.random.PRNGKey(0)
    kx, kp = jax.random.split(key)
    x = jax.random.normal(kx, (batch, in_dim), dtype=jnp.float32)

    raw_params = init_mlp_params(kp, in_dim, out_dim, hidden_dim)
    padded_params = prepare_mlp_params(*raw_params)   # one-time padding/cast

    y = mlp_forward(x, *padded_params, out_dim=out_dim)
    y = jax.block_until_ready(y)

    y_ref = mlp_reference(x, *raw_params)              # full-f32 reference
    assert y.shape == (batch, out_dim)
    # bf16 matmul inputs (f32 accumulation) -> loosened tolerance vs f32 reference.
    assert jnp.allclose(y, y_ref, atol=5e-2, rtol=5e-2), "mismatch vs reference"

    print("KERNEL_OK")
</pallas_src>

<mosaic_0001>
module attributes {stable_mosaic.version = 11 : i64} {
  func.func @_mlp_kernel(%arg0: i32, %arg1: memref<16x128xbf16, #tpu.memory_space<vmem>>, %arg2: memref<128x128xbf16, #tpu.memory_space<vmem>>, %arg3: memref<1x128xf32, #tpu.memory_space<vmem>>, %arg4: memref<128x128xbf16, #tpu.memory_space<vmem>>, %arg5: memref<1x128xf32, #tpu.memory_space<vmem>>, %arg6: memref<128x128xbf16, #tpu.memory_space<vmem>>, %arg7: memref<1x128xf32, #tpu.memory_space<vmem>>, %arg8: memref<16x128xf32, #tpu.memory_space<vmem>>) attributes {dimension_semantics = [#tpu.dimension_semantics<parallel>], iteration_bounds = array<i64: 1>, scalar_prefetch = 0 : i64, scratch_operands = 0 : i64, tpu.core_type = #tpu.core_type<tc>, window_params = [{transform_indices = @transform_0, window_bounds = array<i64: 16, 128>}, {pipeline_mode = #tpu.pipeline_mode<synchronous>, transform_indices = @transform_1, window_bounds = array<i64: 128, 128>}, {pipeline_mode = #tpu.pipeline_mode<synchronous>, transform_indices = @transform_2, window_bounds = array<i64: 1, 128>}, {pipeline_mode = #tpu.pipeline_mode<synchronous>, transform_indices = @transform_3, window_bounds = array<i64: 128, 128>}, {pipeline_mode = #tpu.pipeline_mode<synchronous>, transform_indices = @transform_4, window_bounds = array<i64: 1, 128>}, {pipeline_mode = #tpu.pipeline_mode<synchronous>, transform_indices = @transform_5, window_bounds = array<i64: 128, 128>}, {pipeline_mode = #tpu.pipeline_mode<synchronous>, transform_indices = @transform_6, window_bounds = array<i64: 1, 128>}, {transform_indices = @transform_7, window_bounds = array<i64: 16, 128>}]} {
    %c0 = arith.constant 0 : index
    %c0_0 = arith.constant 0 : index
    %0 = vector.load %arg1[%c0, %c0_0] : memref<16x128xbf16, #tpu.memory_space<vmem>>, vector<16x128xbf16>
    %c0_1 = arith.constant 0 : index
    %c0_2 = arith.constant 0 : index
    %1 = vector.load %arg2[%c0_1, %c0_2] : memref<128x128xbf16, #tpu.memory_space<vmem>>, vector<128x128xbf16>
    %cst = arith.constant dense<0.000000e+00> : vector<16x128xf32>
    %2 = tpu.matmul %0, %1, %cst {dimension_numbers = #tpu.dot_dimension_numbers<[1], [0], [0], [1], [0, 0, 1, 1], [], []>} : vector<16x128xbf16>, vector<128x128xbf16>, vector<16x128xf32> -> vector<16x128xf32>
    %c0_3 = arith.constant 0 : index
    %c0_4 = arith.constant 0 : index
    %3 = vector.load %arg3[%c0_3, %c0_4] : memref<1x128xf32, #tpu.memory_space<vmem>>, vector<1x128xf32>
    %4 = vector.broadcast %3 : vector<1x128xf32> to vector<16x128xf32>
    %5 = arith.addf %2, %4 : vector<16x128xf32>
    %cst_5 = arith.constant 0.000000e+00 : f32
    %6 = vector.broadcast %cst_5 : f32 to vector<16x128xf32>
    %7 = arith.maximumf %5, %6 : vector<16x128xf32>
    %8 = arith.truncf %7 : vector<16x128xf32> to vector<16x128xbf16>
    %c0_6 = arith.constant 0 : index
    %c0_7 = arith.constant 0 : index
    %9 = vector.load %arg4[%c0_6, %c0_7] : memref<128x128xbf16, #tpu.memory_space<vmem>>, vector<128x128xbf16>
    %cst_8 = arith.constant dense<0.000000e+00> : vector<16x128xf32>
    %10 = tpu.matmul %8, %9, %cst_8 {dimension_numbers = #tpu.dot_dimension_numbers<[1], [0], [0], [1], [0, 0, 1, 1], [], []>} : vector<16x128xbf16>, vector<128x128xbf16>, vector<16x128xf32> -> vector<16x128xf32>
    %c0_9 = arith.constant 0 : index
    %c0_10 = arith.constant 0 : index
    %11 = vector.load %arg5[%c0_9, %c0_10] : memref<1x128xf32, #tpu.memory_space<vmem>>, vector<1x128xf32>
    %12 = vector.broadcast %11 : vector<1x128xf32> to vector<16x128xf32>
    %13 = arith.addf %10, %12 : vector<16x128xf32>
    %cst_11 = arith.constant 0.000000e+00 : f32
    %14 = vector.broadcast %cst_11 : f32 to vector<16x128xf32>
    %15 = arith.maximumf %13, %14 : vector<16x128xf32>
    %16 = arith.truncf %15 : vector<16x128xf32> to vector<16x128xbf16>
    %c0_12 = arith.constant 0 : index
    %c0_13 = arith.constant 0 : index
    %17 = vector.load %arg6[%c0_12, %c0_13] : memref<128x128xbf16, #tpu.memory_space<vmem>>, vector<128x128xbf16>
    %cst_14 = arith.constant dense<0.000000e+00> : vector<16x128xf32>
    %18 = tpu.matmul %16, %17, %cst_14 {dimension_numbers = #tpu.dot_dimension_numbers<[1], [0], [0], [1], [0, 0, 1, 1], [], []>} : vector<16x128xbf16>, vector<128x128xbf16>, vector<16x128xf32> -> vector<16x128xf32>
    %c0_15 = arith.constant 0 : index
    %c0_16 = arith.constant 0 : index
    %19 = vector.load %arg7[%c0_15, %c0_16] : memref<1x128xf32, #tpu.memory_space<vmem>>, vector<1x128xf32>
    %20 = vector.broadcast %19 : vector<1x128xf32> to vector<16x128xf32>
    %21 = arith.addf %18, %20 : vector<16x128xf32>
    %c0_17 = arith.constant 0 : index
    %c0_18 = arith.constant 0 : index
    %22 = vector.load %arg8[%c0_17, %c0_18] : memref<16x128xf32, #tpu.memory_space<vmem>>, vector<16x128xf32>
    tpu.vector_store %arg8[%c0_17, %c0_18], %21 {strides = array<i32>} : memref<16x128xf32, #tpu.memory_space<vmem>>, vector<16x128xf32>,
    return
  }
  func.func @transform_0(%arg0: i32) -> (i32, i32) {
    %c0_i32 = arith.constant 0 : i32
    %c0_i32_0 = arith.constant 0 : i32
    return %arg0, %c0_i32 : i32, i32
  }
  func.func @transform_1(%arg0: i32) -> (i32, i32) {
    %c0_i32 = arith.constant 0 : i32
    %c0_i32_0 = arith.constant 0 : i32
    %c0_i32_1 = arith.constant 0 : i32
    return %c0_i32, %c0_i32_0 : i32, i32
  }
  func.func @transform_2(%arg0: i32) -> (i32, i32) {
    %c0_i32 = arith.constant 0 : i32
    %c0_i32_0 = arith.constant 0 : i32
    %c0_i32_1 = arith.constant 0 : i32
    return %c0_i32, %c0_i32_0 : i32, i32
  }
  func.func @transform_3(%arg0: i32) -> (i32, i32) {
    %c0_i32 = arith.constant 0 : i32
    %c0_i32_0 = arith.constant 0 : i32
    %c0_i32_1 = arith.constant 0 : i32
    return %c0_i32, %c0_i32_0 : i32, i32
  }
  func.func @transform_4(%arg0: i32) -> (i32, i32) {
    %c0_i32 = arith.constant 0 : i32
    %c0_i32_0 = arith.constant 0 : i32
    %c0_i32_1 = arith.constant 0 : i32
    return %c0_i32, %c0_i32_0 : i32, i32
  }
  func.func @transform_5(%arg0: i32) -> (i32, i32) {
    %c0_i32 = arith.constant 0 : i32
    %c0_i32_0 = arith.constant 0 : i32
    %c0_i32_1 = arith.constant 0 : i32
    return %c0_i32, %c0_i32_0 : i32, i32
  }
  func.func @transform_6(%arg0: i32) -> (i32, i32) {
    %c0_i32 = arith.constant 0 : i32
    %c0_i32_0 = arith.constant 0 : i32
    %c0_i32_1 = arith.constant 0 : i32
    return %c0_i32, %c0_i32_0 : i32, i32
  }
  func.func @transform_7(%arg0: i32) -> (i32, i32) {
    %c0_i32 = arith.constant 0 : i32
    %c0_i32_0 = arith.constant 0 : i32
    return %arg0, %c0_i32 : i32, i32
  }
}

</mosaic_0001>

<bundles_post_ra>
// kernel: mlp_forward.1
= control target key start
LH: loop header
LB: loop body
LE: loop exit
PB: predicated region body
PF: predicated region fallthrough
CT: control target
= control target key end

     0   :  { %12 = vsyncpa [#allocation3], 0  ;;  %s622_s0 = inlined_call_operand.vmem [shape: bf16[16,128], index: 0, kind: input, shape index: {}]   ;;  %s623_s1 = inlined_call_operand.hbm [shape: bf16[128,128], index: 1, kind: input, shape index: {}]   ;;  %s624_s2 = inlined_call_operand.vmem [shape: f32[1,128], index: 2, kind: input, shape index: {}]   ;;  %s625_s3 = inlined_call_operand.hbm [shape: bf16[128,128], index: 3, kind: input, shape index: {}]   ;;  %s626_s4 = inlined_call_operand.vmem [shape: f32[1,128], index: 4, kind: input, shape index: {}]   ;;  %s627_s5 = inlined_call_operand.hbm [shape: bf16[128,128], index: 5, kind: input, shape index: {}]   ;;  %s628_s6 = inlined_call_operand.vmem [shape: f32[1,128], index: 6, kind: input, shape index: {}]   ;;  %s629_s7 = inlined_call_operand.vmem [shape: f32[16,128], index: 7, kind: output, shape index: {}]  }
   0x1   :  { %13 = vsyncpa [#allocation5], 0  ;;  %s35_s26 = sshll.u32 %s625_s3, 4  ;;  %s550_s27 = smov [#allocation4]   ;;  %s36_s26 = int_to_ptr.hbm [resolvable:$true] %s35_s26 }
   0x2   :  { %s37_s28 = sshll.u32 %s550_s27, 4  ;;  %s20_s8 = sshll.u32 %s623_s1, 4  ;;  %s38_s28 = int_to_ptr.vmem [resolvable:$true] %s37_s28  ;;  %s21_s8 = int_to_ptr.hbm [resolvable:$true] %s20_s8 }
   0x3   :  { %s551_s9 = smov 64   ;;  %s552_s10 = smov 4  }
   0x4   :  { %43 = dma.hbm_to_vmem [thread:$0]  %s36_s26, 1024, %s38_s28, [#allocation5], %s551_s9, %s551_s9, %s552_s10  }
   0x5   :  { %s553_s11 = smov [#allocation2]   ;;  %s50_s15 = sshll.u32 %s627_s5, 4  ;;  %s51_s15 = int_to_ptr.hbm [resolvable:$true] %s50_s15 }
   0x6   :  { %s22_s12 = sshll.u32 %s553_s11, 4  ;;  %s554_s3 = smov [#allocation6]   ;;  %s23_s12 = int_to_ptr.vmem [resolvable:$true] %s22_s12 }
   0x7   :  { %28 = dma.hbm_to_vmem [thread:$0]  %s21_s8, 1024, %s23_s12, [#allocation3], %s551_s9, %s551_s9, %s552_s10  }
   0x8   :  { %s52_s16 = sshll.u32 %s554_s3, 4  ;;  %s53_s16 = int_to_ptr.vmem [resolvable:$true] %s52_s16 }
   0x9   :  { %58 = dma.hbm_to_vmem [thread:$0]  %s51_s15, 1024, %s53_s16, [#allocation5], %s551_s9, %s551_s9, %s552_s10  }
   0xa   :  { %546 = dma.done.wait [#allocation3], 1024  }
   0xb   :  { %547 = vsyncadd [#allocation3], 4294966272 }
   0xc   :  { %548 = dma.done.wait [#allocation5], 2048  }
   0xd   :  { %549 = vsyncadd [#allocation5], 4294965248  ;;  %v449_v0 = vld [vmem:[#allocation2 + $0x38] sm:$0xff]  ;;  %v448_v1 = vld [vmem:[#allocation2 + $0x30] sm:$0xff] }
   0xe   :  { %149 = vmatpush.bf16.msra.mxu0 %v449_v0  ;;  %v457_v2 = vld [vmem:[#allocation4 + $0x38] sm:$0xff]  ;;  %v456_v3 = vld [vmem:[#allocation4 + $0x30] sm:$0xff]  ;;  %v447_v4 = vld [vmem:[#allocation2 + $0x28] sm:$0xff] }
   0xf   :  { %234 = vmatpush.bf16.msra.mxu1 %v457_v2  ;;  %v455_v5 = vld [vmem:[#allocation4 + $0x28] sm:$0xff]  ;;  %v446_v6 = vld [vmem:[#allocation2 + $0x20] sm:$0xff]  ;;  %v445_v8 = vld [vmem:[#allocation2 + $0x18] sm:$0xff] }
  0x10   :  { %v454_v7 = vld [vmem:[#allocation4 + $0x20] sm:$0xff]  ;;  %v444_v9 = vld [vmem:[#allocation2 + $0x10] sm:$0xff]  ;;  %v443_v10 = vld [vmem:[#allocation2 + $0x8] sm:$0xff] }
  0x11   :  { %v442_v11 = vld [vmem:[#allocation2] sm:$0xff]  ;;  %v453_v13 = vld [vmem:[#allocation4 + $0x18] sm:$0xff]  ;;  %v452_v14 = vld [vmem:[#allocation4 + $0x10] sm:$0xff] }
  0x12   :  { %150 = vmatpush.bf16.msra.mxu0 %v448_v1  ;;  %v441_v12 = vld [vmem:[%s622_s0] sm:$0xff]  ;;  %v451_v15 = vld [vmem:[#allocation4 + $0x8] sm:$0xff]  ;;  %v465_v17 = vld [vmem:[#allocation6 + $0x38] sm:$0xff] }
  0x13   :  { %235 = vmatpush.bf16.msra.mxu1 %v456_v3  ;;  %v450_v16 = vld [vmem:[#allocation4] sm:$0xff]  ;;  %319 = vmatpush.bf16.msra.mxu2 %v465_v17  ;;  %v464_v18 = vld [vmem:[#allocation6 + $0x30] sm:$0xff]  ;;  %v463_v19 = vld [vmem:[#allocation6 + $0x28] sm:$0xff] }
  0x14   :  { %v462_v20 = vld [vmem:[#allocation6 + $0x20] sm:$0xff]  ;;  %v461_v29 = vld [vmem:[#allocation6 + $0x18] sm:$0xff]  ;;  %v460_v30 = vld [vmem:[#allocation6 + $0x10] sm:$0xff] }
  0x15   :  { %v471_v22 = vld [vmem:[%s624_s2] ss:$0 sm:$0xff]  ;;  %v459_v31 = vld [vmem:[#allocation6 + $0x8] sm:$0xff] }
  0x16   :  { %151 = vmatpush.bf16.msra.mxu0 %v447_v4  ;;  %v458_v32 = vld [vmem:[#allocation6] sm:$0xff] }
  0x17   :  { %236 = vmatpush.bf16.msra.mxu1 %v455_v5  ;;  %320 = vmatpush.bf16.msra.mxu2 %v464_v18  ;;  %v472_v34 = vld [vmem:[%s626_s4] ss:$0 sm:$0xff] }
  0x18   :  { %v473_v41 = vld [vmem:[%s628_s6] ss:$0 sm:$0xff] }
  0x1a   :  { %152 = vmatpush.bf16.msra.mxu0 %v446_v6 }
  0x1b   :  { %237 = vmatpush.bf16.msra.mxu1 %v454_v7  ;;  %321 = vmatpush.bf16.msra.mxu2 %v463_v19 }
  0x1e   :  { %153 = vmatpush.bf16.msra.mxu0 %v445_v8 }
  0x1f   :  { %238 = vmatpush.bf16.msra.mxu1 %v453_v13  ;;  %322 = vmatpush.bf16.msra.mxu2 %v462_v20 }
  0x22   :  { %154 = vmatpush.bf16.msra.mxu0 %v444_v9 }
  0x23   :  { %239 = vmatpush.bf16.msra.mxu1 %v452_v14  ;;  %323 = vmatpush.bf16.msra.mxu2 %v461_v29 }
  0x26   :  { %155 = vmatpush.bf16.msra.mxu0 %v443_v10 }
  0x27   :  { %240 = vmatpush.bf16.msra.mxu1 %v451_v15  ;;  %324 = vmatpush.bf16.msra.mxu2 %v460_v30 }
  0x2a   :  { %156 = vmatpush.bf16.msra.mxu0 %v442_v11 }
  0x2b   :  { %241 = vmatpush.bf16.msra.mxu1 %v450_v16  ;;  %325 = vmatpush.bf16.msra.mxu2 %v459_v31 }
  0x2d   :  { %157 = vmatmul.bf16.vlgmr.msra.gmra.mxu0 %v441_v12 }
  0x2f   :  { %326 = vmatpush.bf16.msra.mxu2 %v458_v32 }
  0xaa   :  { %v158_v21 = vpop.f32.mrf.mxu0 }
  0xab   :  { %v159_v23 = vadd.f32 %v471_v22, %v158_v21 }
  0xad   :  { %v163_v26 = vmax.f32 %v159_v23, 0.0 }
  0xb2   :  { %v160_v24 = vpop.f32.mrf.mxu0 }
  0xb3   :  { %v161_v25 = vadd.f32 %v471_v22, %v160_v24 }
  0xb5   :  { %v164_v27 = vmax.f32 %v161_v25, 0.0 }
  0xb7   :  { %v165_v28 = vpack.c.bf16 %v164_v27, %v163_v26 }
  0xb9   :  { %242 = vmatmul.bf16.vlgmr.msra.gmra.mxu1 %v165_v28 }
 0x136   :  { %v243_v33 = vpop.f32.mrf.mxu1 }
 0x137   :  { %v244_v35 = vadd.f32 %v472_v34, %v243_v33 }
 0x139   :  { %v248_v38 = vmax.f32 %v244_v35, 0.0 }
 0x13e   :  { %v245_v36 = vpop.f32.mrf.mxu1 }
 0x13f   :  { %v246_v37 = vadd.f32 %v472_v34, %v245_v36 }
 0x141   :  { %v249_v39 = vmax.f32 %v246_v37, 0.0 }
 0x143   :  { %v250_v40 = vpack.c.bf16 %v249_v39, %v248_v38 }
 0x145   :  { %327 = vmatmul.bf16.vlgmr.msra.gmra.mxu2 %v250_v40 }
 0x1c8   :  { %v328_v42 = vpop.f32.mrf.mxu2 }
 0x1c9   :  { %v329_v43 = vadd.f32 %v473_v41, %v328_v42 }
 0x1cb   :  { %333 = vst [vmem:[%s629_s7] sm:$0xff] %v329_v43 }
 0x1d0   :  { %v330_v44 = vpop.f32.mrf.mxu2 }
 0x1d1   :  { %v331_v45 = vadd.f32 %v473_v41, %v330_v44 }
 0x1d3   :  { %334 = vst [vmem:[%s629_s7 + $0x8] sm:$0xff] %v331_v45 }
 0x1d4   :  { %339 = vsyncpa [#allocation3], 1 }
 0x1d5   :  { %340 = vsyncpa [#allocation5], 1 }

</bundles_post_ra>
